<compile_context>
chip_gen: v7x
topology: tpu7x:2x2x1
jax: 0.10.0
libtpu: 0.0.40
codegen_flags: <defaults>
</compile_context>

<pallas_src>
import functools

import jax
import jax.numpy as jnp
from jax import lax
from jax.experimental import pallas as pl
from jax.experimental.pallas import tpu as pltpu


def _log_softmax(z):
    m = jnp.max(z, axis=-1, keepdims=True)
    zs = z - m
    return zs - jnp.log(jnp.sum(jnp.exp(zs), axis=-1, keepdims=True))


def vat_kernel(*refs, has_p, xi, epsilon, it):
    if has_p:
        x_ref, r0_ref, p_ref, w_ref, wt_ref, b_ref, out_ref = refs
    else:
        x_ref, r0_ref, w_ref, wt_ref, b_ref, out_ref = refs

    x = x_ref[...]          # (TN, D) batch tile
    r0 = r0_ref[...]        # (TN, D) Gaussian noise tile
    w = w_ref[...]          # (D, C)  resident across the grid
    wt = wt_ref[...]        # (C, D)  pre-transposed W, resident
    b = b_ref[...]          # (1, C)  resident

    # ---- target log-probs p and softmax exp(p); fused "model(x)" when p is None
    if has_p:
        p = p_ref[...]
        exp_p = jnp.exp(p)
    else:
        z0 = jnp.dot(x, w, preferred_element_type=jnp.float32) + b
        m0 = jnp.max(z0, axis=-1, keepdims=True)
        e0 = jnp.exp(z0 - m0)
        s0 = jnp.sum(e0, axis=-1, keepdims=True)
        p = (z0 - m0) - jnp.log(s0)
        exp_p = e0 / s0                      # softmax(z0) == exp(p), no re-exp

    # ---- initial random unit direction (noise generated outside the kernel)
    r = r0 * lax.rsqrt(jnp.sum(r0 * r0, axis=-1, keepdims=True))

    # ---- power iteration(s): analytic grad of batchmean-KL w.r.t. r.
    #      (1/N batchmean factor cancels under per-row L2 normalization.)
    def power_step(r):
        z = jnp.dot(x + xi * r, w, preferred_element_type=jnp.float32) + b
        m = jnp.max(z, axis=-1, keepdims=True)
        e = jnp.exp(z - m)
        s = e / jnp.sum(e, axis=-1, keepdims=True)
        g = jnp.dot(s - exp_p, wt, preferred_element_type=jnp.float32) + 1e-16
        return g * lax.rsqrt(jnp.sum(g * g, axis=-1, keepdims=True))

    if it <= 4:                      # typical VAT: it == 1 -> cheap unroll
        for _ in range(it):
            r = power_step(r)
    else:                            # large it: bound live ranges with a loop
        r = lax.fori_loop(0, it, lambda _, rr: power_step(rr), r)

    # ---- final divergence with the epsilon-scaled perturbation
    z = jnp.dot(x + epsilon * r, w, preferred_element_type=jnp.float32) + b
    q = _log_softmax(z)
    kl = jnp.sum(exp_p * (p - q), axis=-1, keepdims=True)   # (TN, 1)
    kl = jnp.sum(kl, axis=0, keepdims=True)                 # (1, 1) tile partial
    # Lane/sublane-aligned partial-sum block; reduced (and divided by N) outside.
    out_ref[...] = jnp.broadcast_to(kl, out_ref.shape)


def _pick_batch_tile(n):
    for t in (256, 128, 64, 32, 16, 8):
        if n % t == 0:
            return t
    return n     # small / ragged batch: one full-block tile


def vat_loss(x, w, b, noise_key, *, epsilon, xi=1e-6, it=1, p=None):
    """Equivalent of VATloss(epsilon, xi, it).forward(model, x, p)."""
    x = x.astype(jnp.float32)
    n, d = x.shape
    c = w.shape[1]
    w = w.astype(jnp.float32)
    wt = jnp.transpose(w)                     # transposed once, outside the kernel
    b2 = b.reshape(1, c).astype(jnp.float32)

    tn = _pick_batch_tile(n)
    num_tiles = n // tn

    # exact N(0,1) noise, same role as torch.randn_like(x)
    r0 = jax.random.normal(noise_key, (n, d), dtype=jnp.float32)

    has_p = p is not None
    kern = functools.partial(vat_kernel, has_p=has_p, xi=float(xi),
                             epsilon=float(epsilon), it=int(it))

    in_specs = [
        pl.BlockSpec((tn, d), lambda i: (i, 0)),   # x  tile
        pl.BlockSpec((tn, d), lambda i: (i, 0)),   # r0 tile
    ]
    args = [x, r0]
    if has_p:
        in_specs.append(pl.BlockSpec((tn, c), lambda i: (i, 0)))  # p tile
        args.append(p.astype(jnp.float32))
    in_specs += [
        pl.BlockSpec((d, c), lambda i: (0, 0)),   # W    (resident)
        pl.BlockSpec((c, d), lambda i: (0, 0)),   # W^T  (resident)
        pl.BlockSpec((1, c), lambda i: (0, 0)),   # b    (resident)
    ]
    args += [w, wt, b2]

    partials = pl.pallas_call(
        kern,
        grid_spec=pltpu.PrefetchScalarGridSpec(
            num_scalar_prefetch=0,
            grid=(num_tiles,),
            in_specs=in_specs,
            out_specs=pl.BlockSpec((8, 128), lambda i: (i, 0)),
        ),
        out_shape=jax.ShapeDtypeStruct((num_tiles * 8, 128), jnp.float32),
        compiler_params=pltpu.CompilerParams(
            # independent per-tile partials -> safe to shard across TCs (v7x)
            dimension_semantics=("parallel",),
        ),
    )(*args)

    # one scalar per tile (broadcast inside its (8,128) block) -> batchmean
    tile_sums = partials.reshape(num_tiles, 8, 128)[:, 0, 0]
    return jnp.sum(tile_sums) / n


if __name__ == "__main__":
    # small, deterministic problem: batch=8, features=32, classes=16
    N, D, C = 8, 32, 16
    key = jax.random.PRNGKey(0)
    kx, kw, kb, kr = jax.random.split(key, 4)

    x = jax.random.normal(kx, (N, D), dtype=jnp.float32)
    w = jax.random.normal(kw, (D, C), dtype=jnp.float32) * (1.0 / jnp.sqrt(D))
    b = jax.random.normal(kb, (C,), dtype=jnp.float32) * 0.1

    # VATloss(epsilon=1.0, xi=1e-6, it=1).forward(model, x) with p=None
    div = vat_loss(x, w, b, kr, epsilon=1.0, xi=1e-6, it=1, p=None)
    div = jax.block_until_ready(div)

    assert div.shape == () and bool(jnp.isfinite(div)), "VAT loss not finite"
    print("KERNEL_OK")
</pallas_src>

<mosaic_0001>
module attributes {stable_mosaic.version = 11 : i64} {
  func.func @vat_kernel(%arg0: i32, %arg1: memref<8x32xf32, #tpu.memory_space<vmem>>, %arg2: memref<8x32xf32, #tpu.memory_space<vmem>>, %arg3: memref<32x16xf32, #tpu.memory_space<vmem>>, %arg4: memref<16x32xf32, #tpu.memory_space<vmem>>, %arg5: memref<1x16xf32, #tpu.memory_space<vmem>>, %arg6: memref<8x128xf32, #tpu.memory_space<vmem>>) attributes {dimension_semantics = [#tpu.dimension_semantics<parallel>], iteration_bounds = array<i64: 1>, scalar_prefetch = 0 : i64, scratch_operands = 0 : i64, tpu.core_type = #tpu.core_type<tc>, window_params = [{transform_indices = @transform_0, window_bounds = array<i64: 8, 32>}, {transform_indices = @transform_1, window_bounds = array<i64: 8, 32>}, {pipeline_mode = #tpu.pipeline_mode<synchronous>, transform_indices = @transform_2, window_bounds = array<i64: 32, 16>}, {pipeline_mode = #tpu.pipeline_mode<synchronous>, transform_indices = @transform_3, window_bounds = array<i64: 16, 32>}, {pipeline_mode = #tpu.pipeline_mode<synchronous>, transform_indices = @transform_4, window_bounds = array<i64: 1, 16>}, {transform_indices = @transform_5, window_bounds = array<i64: 8, 128>}]} {
    %c0 = arith.constant 0 : index
    %c0_0 = arith.constant 0 : index
    %0 = vector.load %arg1[%c0, %c0_0] : memref<8x32xf32, #tpu.memory_space<vmem>>, vector<8x32xf32>
    %c0_1 = arith.constant 0 : index
    %c0_2 = arith.constant 0 : index
    %1 = vector.load %arg2[%c0_1, %c0_2] : memref<8x32xf32, #tpu.memory_space<vmem>>, vector<8x32xf32>
    %c0_3 = arith.constant 0 : index
    %c0_4 = arith.constant 0 : index
    %2 = vector.load %arg3[%c0_3, %c0_4] : memref<32x16xf32, #tpu.memory_space<vmem>>, vector<32x16xf32>
    %c0_5 = arith.constant 0 : index
    %c0_6 = arith.constant 0 : index
    %3 = vector.load %arg4[%c0_5, %c0_6] : memref<16x32xf32, #tpu.memory_space<vmem>>, vector<16x32xf32>
    %c0_7 = arith.constant 0 : index
    %c0_8 = arith.constant 0 : index
    %4 = vector.load %arg5[%c0_7, %c0_8] : memref<1x16xf32, #tpu.memory_space<vmem>>, vector<1x16xf32>
    %cst = arith.constant dense<0.000000e+00> : vector<8x16xf32>
    %5 = tpu.matmul %0, %2, %cst {dimension_numbers = #tpu.dot_dimension_numbers<[1], [0], [0], [1], [0, 0, 1, 1], [], []>} : vector<8x32xf32>, vector<32x16xf32>, vector<8x16xf32> -> vector<8x16xf32>
    %6 = vector.broadcast %4 : vector<1x16xf32> to vector<8x16xf32>
    %7 = arith.addf %5, %6 : vector<8x16xf32>
    %cst_9 = arith.constant dense<0xFF800000> : vector<8xf32>
    %8 = vector.multi_reduction <maximumf>, %7, %cst_9 [1] : vector<8x16xf32> to vector<8xf32>
    %9 = vector.shape_cast %8 : vector<8xf32> to vector<8x1xf32>
    %10 = vector.broadcast %9 : vector<8x1xf32> to vector<8x16xf32>
    %11 = arith.subf %7, %10 : vector<8x16xf32>
    %12 = math.exp %11 : vector<8x16xf32>
    %cst_10 = arith.constant dense<0.000000e+00> : vector<8xf32>
    %13 = vector.multi_reduction <add>, %12, %cst_10 [1] : vector<8x16xf32> to vector<8xf32>
    %14 = vector.shape_cast %13 : vector<8xf32> to vector<8x1xf32>
    %15 = vector.broadcast %9 : vector<8x1xf32> to vector<8x16xf32>
    %16 = arith.subf %7, %15 : vector<8x16xf32>
    %17 = math.log %14 : vector<8x1xf32>
    %18 = vector.broadcast %17 : vector<8x1xf32> to vector<8x16xf32>
    %19 = arith.subf %16, %18 : vector<8x16xf32>
    %20 = vector.broadcast %14 : vector<8x1xf32> to vector<8x16xf32>
    %21 = arith.divf %12, %20 : vector<8x16xf32>
    %22 = arith.mulf %1, %1 : vector<8x32xf32>
    %cst_11 = arith.constant dense<0.000000e+00> : vector<8xf32>
    %23 = vector.multi_reduction <add>, %22, %cst_11 [1] : vector<8x32xf32> to vector<8xf32>
    %24 = vector.shape_cast %23 : vector<8xf32> to vector<8x1xf32>
    %25 = math.rsqrt %24 : vector<8x1xf32>
    %26 = vector.broadcast %25 : vector<8x1xf32> to vector<8x32xf32>
    %27 = arith.mulf %1, %26 : vector<8x32xf32>
    %cst_12 = arith.constant 9.99999997E-7 : f32
    %28 = vector.broadcast %cst_12 : f32 to vector<8x32xf32>
    %29 = arith.mulf %28, %27 : vector<8x32xf32>
    %30 = arith.addf %0, %29 : vector<8x32xf32>
    %cst_13 = arith.constant dense<0.000000e+00> : vector<8x16xf32>
    %31 = tpu.matmul %30, %2, %cst_13 {dimension_numbers = #tpu.dot_dimension_numbers<[1], [0], [0], [1], [0, 0, 1, 1], [], []>} : vector<8x32xf32>, vector<32x16xf32>, vector<8x16xf32> -> vector<8x16xf32>
    %32 = vector.broadcast %4 : vector<1x16xf32> to vector<8x16xf32>
    %33 = arith.addf %31, %32 : vector<8x16xf32>
    %cst_14 = arith.constant dense<0xFF800000> : vector<8xf32>
    %34 = vector.multi_reduction <maximumf>, %33, %cst_14 [1] : vector<8x16xf32> to vector<8xf32>
    %35 = vector.shape_cast %34 : vector<8xf32> to vector<8x1xf32>
    %36 = vector.broadcast %35 : vector<8x1xf32> to vector<8x16xf32>
    %37 = arith.subf %33, %36 : vector<8x16xf32>
    %38 = math.exp %37 : vector<8x16xf32>
    %cst_15 = arith.constant dense<0.000000e+00> : vector<8xf32>
    %39 = vector.multi_reduction <add>, %38, %cst_15 [1] : vector<8x16xf32> to vector<8xf32>
    %40 = vector.shape_cast %39 : vector<8xf32> to vector<8x1xf32>
    %41 = vector.broadcast %40 : vector<8x1xf32> to vector<8x16xf32>
    %42 = arith.divf %38, %41 : vector<8x16xf32>
    %43 = arith.subf %42, %21 : vector<8x16xf32>
    %cst_16 = arith.constant dense<0.000000e+00> : vector<8x32xf32>
    %44 = tpu.matmul %43, %3, %cst_16 {dimension_numbers = #tpu.dot_dimension_numbers<[1], [0], [0], [1], [0, 0, 1, 1], [], []>} : vector<8x16xf32>, vector<16x32xf32>, vector<8x32xf32> -> vector<8x32xf32>
    %cst_17 = arith.constant 1.000000e-16 : f32
    %45 = vector.broadcast %cst_17 : f32 to vector<8x32xf32>
    %46 = arith.addf %44, %45 : vector<8x32xf32>
    %47 = arith.mulf %46, %46 : vector<8x32xf32>
    %cst_18 = arith.constant dense<0.000000e+00> : vector<8xf32>
    %48 = vector.multi_reduction <add>, %47, %cst_18 [1] : vector<8x32xf32> to vector<8xf32>
    %49 = vector.shape_cast %48 : vector<8xf32> to vector<8x1xf32>
    %50 = math.rsqrt %49 : vector<8x1xf32>
    %51 = vector.broadcast %50 : vector<8x1xf32> to vector<8x32xf32>
    %52 = arith.mulf %46, %51 : vector<8x32xf32>
    %cst_19 = arith.constant 1.000000e+00 : f32
    %53 = vector.broadcast %cst_19 : f32 to vector<8x32xf32>
    %54 = arith.mulf %53, %52 : vector<8x32xf32>
    %55 = arith.addf %0, %54 : vector<8x32xf32>
    %cst_20 = arith.constant dense<0.000000e+00> : vector<8x16xf32>
    %56 = tpu.matmul %55, %2, %cst_20 {dimension_numbers = #tpu.dot_dimension_numbers<[1], [0], [0], [1], [0, 0, 1, 1], [], []>} : vector<8x32xf32>, vector<32x16xf32>, vector<8x16xf32> -> vector<8x16xf32>
    %57 = vector.broadcast %4 : vector<1x16xf32> to vector<8x16xf32>
    %58 = arith.addf %56, %57 : vector<8x16xf32>
    %cst_21 = arith.constant dense<0xFF800000> : vector<8xf32>
    %59 = vector.multi_reduction <maximumf>, %58, %cst_21 [1] : vector<8x16xf32> to vector<8xf32>
    %60 = vector.shape_cast %59 : vector<8xf32> to vector<8x1xf32>
    %61 = vector.broadcast %60 : vector<8x1xf32> to vector<8x16xf32>
    %62 = arith.subf %58, %61 : vector<8x16xf32>
    %63 = math.exp %62 : vector<8x16xf32>
    %cst_22 = arith.constant dense<0.000000e+00> : vector<8xf32>
    %64 = vector.multi_reduction <add>, %63, %cst_22 [1] : vector<8x16xf32> to vector<8xf32>
    %65 = vector.shape_cast %64 : vector<8xf32> to vector<8x1xf32>
    %66 = math.log %65 : vector<8x1xf32>
    %67 = vector.broadcast %66 : vector<8x1xf32> to vector<8x16xf32>
    %68 = arith.subf %62, %67 : vector<8x16xf32>
    %69 = arith.subf %19, %68 : vector<8x16xf32>
    %70 = arith.mulf %21, %69 : vector<8x16xf32>
    %cst_23 = arith.constant dense<0.000000e+00> : vector<8xf32>
    %71 = vector.multi_reduction <add>, %70, %cst_23 [1] : vector<8x16xf32> to vector<8xf32>
    %72 = vector.shape_cast %71 : vector<8xf32> to vector<8x1xf32>
    %cst_24 = arith.constant dense<0.000000e+00> : vector<1xf32>
    %73 = vector.multi_reduction <add>, %72, %cst_24 [0] : vector<8x1xf32> to vector<1xf32>
    %74 = vector.shape_cast %73 : vector<1xf32> to vector<1x1xf32>
    %75 = vector.shape_cast %74 : vector<1x1xf32> to vector<1x1xf32>
    %76 = vector.broadcast %75 : vector<1x1xf32> to vector<8x128xf32>
    %c0_25 = arith.constant 0 : index
    %c0_26 = arith.constant 0 : index
    %77 = vector.load %arg6[%c0_25, %c0_26] : memref<8x128xf32, #tpu.memory_space<vmem>>, vector<8x128xf32>
    tpu.vector_store %arg6[%c0_25, %c0_26], %76 {strides = array<i32>} : memref<8x128xf32, #tpu.memory_space<vmem>>, vector<8x128xf32>,
    return
  }
  func.func @transform_0(%arg0: i32) -> (i32, i32) {
    %c0_i32 = arith.constant 0 : i32
    %c0_i32_0 = arith.constant 0 : i32
    return %arg0, %c0_i32 : i32, i32
  }
  func.func @transform_1(%arg0: i32) -> (i32, i32) {
    %c0_i32 = arith.constant 0 : i32
    %c0_i32_0 = arith.constant 0 : i32
    return %arg0, %c0_i32 : i32, i32
  }
  func.func @transform_2(%arg0: i32) -> (i32, i32) {
    %c0_i32 = arith.constant 0 : i32
    %c0_i32_0 = arith.constant 0 : i32
    %c0_i32_1 = arith.constant 0 : i32
    return %c0_i32, %c0_i32_0 : i32, i32
  }
  func.func @transform_3(%arg0: i32) -> (i32, i32) {
    %c0_i32 = arith.constant 0 : i32
    %c0_i32_0 = arith.constant 0 : i32
    %c0_i32_1 = arith.constant 0 : i32
    return %c0_i32, %c0_i32_0 : i32, i32
  }
  func.func @transform_4(%arg0: i32) -> (i32, i32) {
    %c0_i32 = arith.constant 0 : i32
    %c0_i32_0 = arith.constant 0 : i32
    %c0_i32_1 = arith.constant 0 : i32
    return %c0_i32, %c0_i32_0 : i32, i32
  }
  func.func @transform_5(%arg0: i32) -> (i32, i32) {
    %c0_i32 = arith.constant 0 : i32
    %c0_i32_0 = arith.constant 0 : i32
    return %arg0, %c0_i32 : i32, i32
  }
}

</mosaic_0001>

<bundles_post_ra>
// kernel: tpu_custom_call.1
= control target key start
LH: loop header
LB: loop body
LE: loop exit
PB: predicated region body
PF: predicated region fallthrough
CT: control target
= control target key end

     0   :  { %vm36_vm0 = vcmask 261120   ;;  %v539_v3 = vmov 0.0|0.0   ;;  %vm540_vm1 = vmmov 0   ;;  %v541_v8 = vmov 0.0   ;;  %s638_s0 = inlined_call_operand.vmem [shape: f32[8,32], index: 0, kind: input, shape index: {}]   ;;  %s639_s1 = inlined_call_operand.vmem [shape: f32[8,32], index: 1, kind: input, shape index: {}]   ;;  %s640_s2 = inlined_call_operand.vmem [shape: f32[32,16], index: 2, kind: input, shape index: {}]   ;;  %s641_s3 = inlined_call_operand.vmem [shape: f32[16,32], index: 3, kind: input, shape index: {}]   ;;  %s642_s4 = inlined_call_operand.vmem [shape: f32[1,16], index: 4, kind: input, shape index: {}]   ;;  %s643_s5 = inlined_call_operand.hbm [shape: f32[8,128], index: 5, kind: output, shape index: {}]  }
   0x1   :  { %v23_v0 = vld [vmem:[%s640_s2] sm:$0xff]  ;;  %v24_v1 = vld [vmem:[%s640_s2 + $0x8] sm:$0xff]  ;;  %472 = vmatprep.subr.bf16.mxu0 %v539_v3  ;;  %v25_v6 = vld [vmem:[%s640_s2 + $0x10] sm:$0xff]  ;;  %478 = vmatprep.subr.bf16.mxu1 %v539_v3 }
   0x2   :  { %v22_v2 = vld [vmem:[%s639_s1] sm:$0xff]  ;;  %v473_v4 = vpack.c.bf16 %v24_v1, %v23_v0  ;;  %v26_v7 = vld [vmem:[%s640_s2 + $0x18] sm:$0xff]  ;;  %440 = vmatprep.mubr.msk.f32.mxu0 %vm540_vm1, %v541_v8  ;;  %451 = vmatprep.mubr.msk.f32.mxu1 %vm540_vm1, %v541_v8 }
   0x3   :  { %v125_v5 = vmul.f32 %v22_v2, %v22_v2 }
   0x4   :  { %10 = vsyncpa [#allocation3], 0  ;;  %474 = vmatpush3.bf16.msra.mxu0 %v473_v4  ;;  %v476_v10 = vpack.c.bf16 %v26_v7, %v25_v6  ;;  %480 = vmatpush3.bf16.msra.mxu1 %v473_v4  ;;  %v594_v11 = vld [vmem:[%s638_s0] sm:$0xff]  ;;  %vm110_vm2 = vcmask 130048   ;;  %v28_v37 = vld [vmem:[%s641_s3 + $0x8] sm:$0xff] }
   0x5   :  { %v126_v9 = vsel %vm36_vm0, %v125_v5, 0.0  ;;  %475 = vmatprep.subr.bf16.mxu0 %v539_v3  ;;  %481 = vmatprep.subr.bf16.mxu1 %v539_v3  ;;  %v409_v17 = vld [vmem:[%s642_s4] ss:$0 sm:$0xff] }
   0x6   :  { %127 = vadd.xlane.f32.xlu0 %v126_v9  ;;  %v27_v36 = vld [vmem:[%s641_s3] sm:$0xff]  ;;  %s542_s3 = smov [#allocation2]  }
   0x7   :  { %v485_v38 = vpack.c.bf16 %v28_v37, %v27_v36  ;;  %s401_s7 = sshll.u32 %s542_s3, 4  ;;  %s402_s7 = int_to_ptr.vmem [resolvable:$true] %s401_s7 }
   0x8   :  { %477 = vmatpush3.bf16.msra.mxu0 %v476_v10  ;;  %483 = vmatpush3.bf16.msra.mxu1 %v476_v10  ;;  %s515_s8 = scalar_lea.vmem %s402_s7, 128  ;;  %p520_p1 = scmp.lt.s32.totalorder %s402_s7, %s402_s7 }
   0x9   :  { %484 = vmatprep.subr.bf16.mxu0 %v539_v3  ;;  %487 = vmatprep.subr.bf16.mxu1 %v539_v3  ;;  %p516_p0 = scmp.ne.s32.totalorder %s402_s7, %s515_s8  ;;  %p521_p2 = scmp.lt.s32.totalorder %s515_s8, %s515_s8 }
   0xb   :  { %441 = vmatmul.mubr.msk.f32.vlgmr.msra.gmra.mrb[0].mxu0 %vm36_vm0, %v594_v11  ;;  %p522_p3 = por %p521_p2, %p520_p1 }
   0xc   :  { %458 = vmatprep.mubr.msk.f32.mxu0 %vm540_vm1, %v541_v8  ;;  %486 = vmatpush3.bf16.msra.mxu0 %v485_v38 }
   0xd   :  { %p523_p4 = pnand %p522_p3, %p516_p0 }
  0x93   :  { %v128_v12 = vpop.xlane.xlu0 %127 }
  0x94   :  { %497 = vrsqrt.f32 %v128_v12 }
  0x9e   :  { %v498_v13 = vpop.eup %497 }
  0x9f   :  { %v130_v14 = vmul.f32 %v498_v13, %v22_v2 }
  0xa1   :  { %v131_v15 = vmul.f32 1e-06, %v130_v14 }
  0xa3   :  { %v132_v16 = vadd.f32 %v131_v15, %v594_v11 }
  0xa5   :  { %452 = vmatmul.mubr.msk.f32.vlgmr.msra.gmra.mrb[0].mxu1 %vm36_vm0, %v132_v16 }
  0xa6   :  { %489 = vmatpush3.bf16.msra.mxu1 %v473_v4  ;;  %469 = vmatprep.mubr.msk.f32.mxu1 %vm540_vm1, %v541_v8 }
  0xa7   :  { %490 = vmatprep.subr.bf16.mxu1 %v539_v3 }
  0xaa   :  { %492 = vmatpush3.bf16.msra.mxu1 %v476_v10 }
  0xde   :  { %v106_v18 = vpop.f32.mrb[0].mxu0 }
  0xdf   :  { %v107_v19 = vadd.f32 %v409_v17, %v106_v18  ;;  %v442_v20 = vpop.f32.mrb[1].mxu0 }
  0xe1   :  { %v111_v21 = vsel %vm110_vm2, %v107_v19, -inf }
  0xe2   :  { %112 = vmax.xlane.f32.xlu0 %v111_v21 }
 0x16f   :  { %v113_v22 = vpop.xlane.xlu0 %112 }
 0x170   :  { %v606_v23 = vsub.f32 %v107_v19, %v113_v22 }
 0x172   :  { %v115_v24 = vmul.f32 1.442695, %v606_v23 }
 0x174   :  { %499 = vpow2.f32 %v115_v24 }
 0x178   :  { %v202_v25 = vpop.f32.mrb[0].mxu1 }
 0x179   :  { %v203_v26 = vadd.f32 %v409_v17, %v202_v25  ;;  %v453_v27 = vpop.f32.mrb[1].mxu1 }
 0x17b   :  { %v206_v28 = vsel %vm110_vm2, %v203_v26, -inf }
 0x17c   :  { %207 = vmax.xlane.f32.xlu1 %v206_v28 }
 0x17e   :  { %v500_v29 = vpop.eup %499 }
 0x17f   :  { %v117_v30 = vsel %vm110_vm2, %v500_v29, 0.0 }
 0x180   :  { %118 = vadd.xlane.f32.xlu1 %v117_v30 }
 0x209   :  { %v208_v31 = vpop.xlane.xlu1 %207 }
 0x20a   :  { %v209_v32 = vsub.f32 %v203_v26, %v208_v31 }
 0x20c   :  { %v210_v33 = vmul.f32 1.442695, %v209_v32 }
 0x20d   :  { %v119_v39 = vpop.xlane.xlu1 %118 }
 0x20e   :  { %501 = vpow2.f32 %v210_v33 }
 0x20f   :  { %503 = vrcp.f32 %v119_v39 }
 0x218   :  { %v502_v34 = vpop.eup %501 }
 0x219   :  { %v212_v35 = vsel %vm110_vm2, %v502_v34, 0.0  ;;  %v504_v41 = vpop.eup %503 }
 0x21a   :  { %213 = vadd.xlane.f32.xlu0 %v212_v35  ;;  %v124_v43 = vmul.f32 %v504_v41, %v500_v29 }
 0x2a7   :  { %v214_v40 = vpop.xlane.xlu0 %213 }
 0x2a8   :  { %505 = vrcp.f32 %v214_v40 }
 0x2b2   :  { %v506_v42 = vpop.eup %505 }
 0x2b3   :  { %v216_v44 = vmul.f32 %v506_v42, %v502_v34 }
 0x2b5   :  { %v217_v45 = vsub.f32 %v216_v44, %v124_v43 }
 0x2b7   :  { %459 = vmatmul.mubr.msk.f32.vlgmr.msra.gmra.mrb[2].mxu0 %vm110_vm2, %v217_v45 }
 0x38a   :  { %v287_v46 = vpop.f32.mrb[2].mxu0 }
 0x38b   :  { %v288_v47 = vadd.f32 1e-16, %v287_v46  ;;  %v460_v48 = vpop.f32.mrb[3].mxu0 }
 0x38d   :  { %v291_v49 = vmul.f32 %v288_v47, %v288_v47 }
 0x38f   :  { %v292_v50 = vsel %vm36_vm0, %v291_v49, 0.0 }
 0x390   :  { %293 = vadd.xlane.f32.xlu1 %v292_v50 }
 0x41d   :  { %v294_v51 = vpop.xlane.xlu1 %293 }
 0x41e   :  { %507 = vrsqrt.f32 %v294_v51 }
 0x428   :  { %v508_v52 = vpop.eup %507 }
 0x429   :  { %v296_v53 = vmul.f32 %v508_v52, %v288_v47 }
 0x42b   :  { %v297_v54 = vadd.f32 %v296_v53, %v594_v11 }
 0x42d   :  { %470 = vmatmul.mubr.msk.f32.vlgmr.msra.gmra.mrb[2].mxu1 %vm36_vm0, %v297_v54 }
 0x500   :  { %v367_v55 = vpop.f32.mrb[2].mxu1 }
 0x501   :  { %v368_v56 = vadd.f32 %v409_v17, %v367_v55  ;;  %v471_v57 = vpop.f32.mrb[3].mxu1 }
 0x503   :  { %v371_v58 = vsel %vm110_vm2, %v368_v56, -inf }
 0x504   :  { %372 = vmax.xlane.f32.xlu0 %v371_v58 }
 0x591   :  { %v373_v59 = vpop.xlane.xlu0 %372 }
 0x592   :  { %v374_v60 = vsub.f32 %v368_v56, %v373_v59 }
 0x594   :  { %v375_v61 = vmul.f32 1.442695, %v374_v60 }
 0x596   :  { %509 = vpow2.f32 %v375_v61 }
 0x597   :  { %511 = vlog2.f32 %v119_v39 }
 0x5a0   :  { %v510_v62 = vpop.eup %509 }
 0x5a1   :  { %v377_v63 = vsel %vm110_vm2, %v510_v62, 0.0  ;;  %v512_v1 = vpop.eup %511 }
 0x5a2   :  { %378 = vadd.xlane.f32.xlu1 %v377_v63  ;;  %v121_v2 = vmul.f32 0.6931472, %v512_v1 }
 0x5a4   :  { %v122_v6 = vsub.f32 %v606_v23, %v121_v2 }
 0x62f   :  { %v379_v0 = vpop.xlane.xlu1 %378 }
 0x630   :  { %513 = vlog2.f32 %v379_v0 }
 0x63a   :  { %v514_v3 = vpop.eup %513 }
 0x63b   :  { %v381_v4 = vmul.f32 0.6931472, %v514_v3 }
 0x63d   :  { %v382_v5 = vsub.f32 %v374_v60, %v381_v4 }
 0x63f   :  { %v383_v7 = vsub.f32 %v122_v6, %v382_v5 }
 0x641   :  { %v384_v8 = vmul.f32 %v383_v7, %v124_v43 }
 0x643   :  { %v385_v9 = vsel %vm110_vm2, %v384_v8, 0.0 }
 0x644   :  { %386 = vadd.xlane.f32.xlu0 %v385_v9 }
 0x6d1   :  { %v387_v10 = vpop.xlane.xlu0 %386 }
 0x6d2   :  { %v388_v11 = vrot.slane %v387_v10, 4 }
 0x6d4   :  { %v389_v12 = vadd.f32 %v388_v11, %v387_v10 }
 0x6d6   :  { %v390_v13 = vrot.slane %v389_v12, 2 }
 0x6d8   :  { %v391_v14 = vadd.f32 %v390_v13, %v389_v12 }
 0x6da   :  { %v392_v15 = vrot.slane %v391_v14, 1 }
 0x6dc   :  { %v393_v16 = vadd.f32 %v392_v15, %v391_v14 }
 0x6de   :  { %394 = vst [vmem:[#allocation2] sm:$0xff] %v393_v16 }
 0x6df   :  { %526 = shalt.err (!%p523_p4)
}
 0x6e0   :  { %s527_s11 = scalar_lea.hbm %s643_s5, 128 }
 0x6e1   :  { %p528_p5 = scmp.ne.s32.totalorder %s643_s5, %s527_s11  ;;  %p531_p6 = scmp.lt.u32.totalorder %s527_s11, %s643_s5 }
 0x6e3   :  { %p533_p7 = pnand %p531_p6, %p528_p5 }
 0x6e5   :  { %536 = shalt.err (!%p533_p7)
}
 0x6e6   :  { %404 = dma.vmem_to_hbm [thread:$0]  %s402_s7, 128, %s643_s5, [#allocation3]  }
 0x6e7   :  { %537 = dma.done.wait [#allocation3], 128  }
 0x6e8   :  { %538 = vsyncadd [#allocation3], 4294967168 }
 0x6e9   :  { %408 = vsyncpa [#allocation3], 1 }

</bundles_post_ra>
